<compile_context>
chip_gen: v7x
topology: tpu7x:2x2x1
jax: 0.10.0
libtpu: 0.0.40
codegen_flags: <defaults>
</compile_context>

<pallas_src>
import functools
import math

import jax
import jax.numpy as jnp
from jax.experimental import pallas as pl
from jax.experimental.pallas import tpu as pltpu


def _sublane_multiple(dtype):
    """Second-minor tiling requirement: 8 (f32), 16 (bf16), 32 (int8/fp8)."""
    itemsize = jnp.dtype(dtype).itemsize
    return max(8, 8 * (4 // max(itemsize, 1)))


def _pick_tile(full, align, target):
    """Largest multiple of `align` that divides `full` and is <= `target`.

    Falls back to the full extent when `full` is not divisible by `align`
    (a full-extent block is always legal), so no masking / tail handling is
    ever needed.
    """
    if full % align != 0 or full <= target:
        return full
    t = (target // align) * align
    while t >= align:
        if full % t == 0:
            return t
        t -= align
    return full


def _coalesce(shape, axes):
    """Merge input-dim runs that stay adjacent and in-order under `axes`.

    Returns (merged_shape, merged_axes) such that
        transpose(x, axes)
          == transpose(x.reshape(merged_shape), merged_axes).reshape(out_shape)
    """
    nd = len(shape)
    inv = [0] * nd
    for pos, d in enumerate(axes):
        inv[d] = pos
    groups = []
    for d in range(nd):
        if d > 0 and inv[d] == inv[d - 1] + 1:
            groups[-1].append(d)
        else:
            groups.append([d])
    merged_shape = tuple(math.prod(shape[d] for d in g) for g in groups)
    order = sorted(range(len(groups)), key=lambda gi: inv[groups[gi][0]])
    return merged_shape, tuple(order)


def _permute_kernel(x_ref, o_ref, *, local_axes):
    v = x_ref[...]
    if local_axes != tuple(range(len(local_axes))):
        # Residual minor transpose over the kernel-visible dims only; all other
        # axis reordering was already done by the BlockSpec index_maps.
        # TODO(synk): sweep pltpu.einshape for the >2-D visible case (may avoid
        # extra Mosaic relayout copies on v6e/v7x; jnp.transpose kept for
        # robustness).
        v = jnp.transpose(v, local_axes)
    o_ref[...] = v


def _permute_core(x, perm):
    """Pallas transpose of `x` by `perm` (perm[0] == 0, non-identity, ndim >= 3)."""
    nd = x.ndim
    shape = x.shape
    itemsize = jnp.dtype(x.dtype).itemsize
    sublane = _sublane_multiple(x.dtype)
    out_shape = tuple(shape[d] for d in perm)

    inv = [0] * nd                       # inv[d] = output position of input dim d
    for pos, d in enumerate(perm):
        inv[d] = pos

    lane_in = nd - 1                     # input minor dim
    d2_in = nd - 2                       # input second-minor dim
    col_in = perm[-1]                    # input dim that becomes the OUTPUT minor dim
    row_o_in = perm[-2]                  # input dim that becomes the OUTPUT second-minor dim
    lane_preserved = (col_in == lane_in)

    # ---- generation-aware block budget -------------------------------------
    try:
        vmem_cap = int(pltpu.get_tpu_info().vmem_capacity_bytes)
        cap_known = True
    except Exception:                    # conservative fallback: assume v7x-sized VMEM
        vmem_cap = 64 << 20
        cap_known = False
    big_vmem = vmem_cap >= (96 << 20)    # v5e / v6e (128 MiB)
    block_budget_bytes = (16 << 20) if big_vmem else (8 << 20)
    budget_elems = max(block_budget_bytes // itemsize, 1)

    # ---- kernel-visible dims (carry aligned / full-extent tiles) ------------
    # Both blocks' minor-two dims must be lane/sublane aligned or full-extent;
    # every other dim becomes a size-1 grid axis and is squeezed away.
    prio = []
    for d in (col_in, lane_in, row_o_in, d2_in):
        if d not in prio:
            prio.append(d)
    visible = set(prio)

    def align_of(d):
        return 128 if d in (lane_in, col_in) else sublane

    def min_tile(d):
        a = align_of(d)
        return a if (shape[d] >= a and shape[d] % a == 0) else shape[d]

    # Lane-dense targets; in the lane-moving case cap every visible tile so the
    # in-VMEM XLU transpose stays hidden under the per-block DMA window.
    targets = {col_in: 1024}
    if lane_in != col_in and lane_in != row_o_in:
        targets[lane_in] = 512
    dim_cap = None if lane_preserved else (2048 if big_vmem else 1024)

    tile = {}
    budget = budget_elems
    for i, d in enumerate(prio):
        rest_min = 1
        for e in prio[i + 1:]:
            rest_min *= min_tile(e)
        allowed = max(budget // max(rest_min, 1), min_tile(d))
        tgt = min(targets.get(d, allowed), allowed)
        if dim_cap is not None:
            tgt = min(tgt, max(dim_cap, min_tile(d)))
        tile[d] = _pick_tile(shape[d], align_of(d), max(tgt, min_tile(d)))
        budget = max(budget // max(tile[d], 1), 1)

    # ---- grid: one axis per OUTPUT dim, lane tiles innermost ----------------
    def blocks_along(d):
        return shape[d] // tile[d] if d in visible else shape[d]

    grid = tuple(blocks_along(perm[k]) for k in range(nd))
    n_grid = len(grid)

    in_block = tuple(tile[d] if d in visible else pl.Squeezed() for d in range(nd))
    out_block = tuple(
        tile[perm[k]] if perm[k] in visible else pl.Squeezed() for k in range(nd)
    )

    def out_index_map(*g):               # grid already walks output blocks in order
        return g

    def in_index_map(*g):                # inverse-permute the output block indices
        return tuple(g[inv[d]] for d in range(nd))

    # Residual transpose over only the kernel-visible dims.
    vis_in = sorted(visible)
    vis_out = [perm[k] for k in range(nd) if perm[k] in visible]
    local_axes = tuple(vis_in.index(d) for d in vis_out)

    # ---- pipelining depth / VMEM limit --------------------------------------
    block_bytes = itemsize
    for d in visible:
        block_bytes *= tile[d]
    total_steps = math.prod(grid)

    triple_buffer = (cap_known and vmem_cap <= (64 << 20) and total_steps >= 8
                     and hasattr(pl, "Buffered"))
    in_spec = None
    if triple_buffer:
        try:                              # v7x: deeper input buffering hides DMA latency
            in_spec = pl.BlockSpec(in_block, in_index_map,
                                   pipeline_mode=pl.Buffered(3))
        except TypeError:
            in_spec = None
    if in_spec is None:
        triple_buffer = False
        in_spec = pl.BlockSpec(in_block, in_index_map)

    in_bufs = 3 if triple_buffer else 2
    buffers_bytes = (in_bufs + 2) * block_bytes
    if big_vmem:
        max_limit = min(vmem_cap - (16 << 20), 112 << 20)   # v5e/v6e: use the 128 MiB
    else:
        max_limit = max(vmem_cap - (8 << 20), 32 << 20)     # v7x: leave scratch headroom
    vmem_limit = int(max(32 << 20, min(buffers_bytes + (16 << 20), max_limit)))

    # Megacore split on an outer grid axis (v7x): innermost lane-tile axis is
    # "arbitrary" whenever the outer axes can carry the core split.
    if n_grid >= 2 and math.prod(grid[:-1]) >= 2:
        dim_sem = ("parallel",) * (n_grid - 1) + ("arbitrary",)
    else:
        dim_sem = ("parallel",) * n_grid

    kernel = functools.partial(_permute_kernel, local_axes=local_axes)

    return pl.pallas_call(
        kernel,
        out_shape=jax.ShapeDtypeStruct(out_shape, x.dtype),
        grid=grid,
        in_specs=[in_spec],
        out_specs=pl.BlockSpec(out_block, out_index_map),
        compiler_params=pltpu.CompilerParams(
            dimension_semantics=dim_sem,
            vmem_limit_bytes=vmem_limit,
        ),
        # Pure data movement: tell XLA's scheduler this call is memory-bound.
        cost_estimate=pl.CostEstimate(
            flops=0, transcendentals=0,
            bytes_accessed=2 * x.size * itemsize,
        ),
    )(x)


def permute_pallas(x, new_dim_order):
    """Pallas equivalent of Permute(new_dim_order).forward(x)."""
    assert isinstance(new_dim_order, tuple)
    assert sorted(new_dim_order) == list(range(len(new_dim_order)))
    if len(x.shape[1:]) != len(new_dim_order):
        raise Exception(
            f"Reshape: expected input with {len(new_dim_order)} dimensions, "
            f"but got {len(x.shape[1:])} dimensions instead"
        )

    full_axes = (0,) + tuple(d + 1 for d in new_dim_order)
    out_shape = tuple(x.shape[a] for a in full_axes)

    # Identity permutation: nothing to move.
    if x.ndim < 2 or full_axes == tuple(range(x.ndim)):
        return x
    if x.size == 0:
        return jnp.transpose(x, full_axes)

    # Coalesce input dims that stay adjacent and in-order under the permutation;
    # this widens the output lane dim (unmasked lane-dense stores) and removes
    # grid axes.  The reshapes are wrapper-side layout plumbing.
    merged_shape, merged_perm = _coalesce(x.shape, full_axes)
    if merged_perm == tuple(range(len(merged_perm))):
        return x.reshape(out_shape)      # only reachable for identity perms
    out_merged = _permute_core(x.reshape(merged_shape), merged_perm)
    return out_merged.reshape(out_shape)


if __name__ == "__main__":
    # Test 1 (lane-moving path): (B, C, H, W) = (2, 4, 16, 16),
    # permute non-batch dims (C,H,W) -> (W,C,H).
    x1 = jax.random.normal(jax.random.PRNGKey(0), (2, 4, 16, 16), dtype=jnp.float32)
    order1 = (2, 0, 1)
    out1 = jax.block_until_ready(permute_pallas(x1, order1))
    ref1 = jnp.transpose(x1, (0, 3, 1, 2))
    assert out1.shape == ref1.shape, (out1.shape, ref1.shape)
    assert jnp.array_equal(out1, ref1), "mismatch vs reference permute (test 1)"

    # Test 2 (lane-preserved path): (B, C, S, D) = (2, 8, 16, 128),
    # permute non-batch dims (C,S,D) -> (S,C,D).
    x2 = jax.random.normal(jax.random.PRNGKey(0), (2, 8, 16, 128), dtype=jnp.float32)
    order2 = (1, 0, 2)
    out2 = jax.block_until_ready(permute_pallas(x2, order2))
    ref2 = jnp.transpose(x2, (0, 2, 1, 3))
    assert out2.shape == ref2.shape, (out2.shape, ref2.shape)
    assert jnp.array_equal(out2, ref2), "mismatch vs reference permute (test 2)"

    print("KERNEL_OK")
</pallas_src>

<mosaic_0001>
module attributes {stable_mosaic.version = 11 : i64} {
  func.func @_permute_kernel(%arg0: i32, %arg1: i32, %arg2: i32, %arg3: memref<1x64x16xf32, #tpu.memory_space<vmem>>, %arg4: memref<1x16x64xf32, #tpu.memory_space<vmem>>) attributes {dimension_semantics = [#tpu.dimension_semantics<parallel>, #tpu.dimension_semantics<parallel>, #tpu.dimension_semantics<arbitrary>], iteration_bounds = array<i64: 2, 1, 1>, scalar_prefetch = 0 : i64, scratch_operands = 0 : i64, tpu.core_type = #tpu.core_type<tc>, window_params = [{transform_indices = @transform_0, window_bounds = array<i64: 1, 64, 16>}, {transform_indices = @transform_1, window_bounds = array<i64: 1, 16, 64>}]} {
    %c0 = arith.constant 0 : index
    %c0_0 = arith.constant 0 : index
    %c0_1 = arith.constant 0 : index
    %0 = vector.load %arg3[%c0, %c0_0, %c0_1] : memref<1x64x16xf32, #tpu.memory_space<vmem>>, vector<1x64x16xf32>
    %1 = vector.shape_cast %0 : vector<1x64x16xf32> to vector<64x16xf32>
    %2 = tpu.transpose %1, [1, 0] : vector<64x16xf32> -> vector<16x64xf32>
    %c0_2 = arith.constant 0 : index
    %c0_3 = arith.constant 0 : index
    %c0_4 = arith.constant 0 : index
    %3 = vector.load %arg4[%c0_2, %c0_3, %c0_4] : memref<1x16x64xf32, #tpu.memory_space<vmem>>, vector<1x16x64xf32>
    %4 = vector.shape_cast %3 : vector<1x16x64xf32> to vector<16x64xf32>
    %5 = vector.shape_cast %2 : vector<16x64xf32> to vector<1x16x64xf32>
    tpu.vector_store %arg4[%c0_2, %c0_3, %c0_4], %5 {strides = array<i32>} : memref<1x16x64xf32, #tpu.memory_space<vmem>>, vector<1x16x64xf32>,
    return
  }
  func.func @transform_0(%arg0: i32, %arg1: i32, %arg2: i32) -> (i32, i32, i32) {
    %c0_i32 = arith.constant 0 : i32
    return %arg0, %arg2, %arg1 : i32, i32, i32
  }
  func.func @transform_1(%arg0: i32, %arg1: i32, %arg2: i32) -> (i32, i32, i32) {
    %c0_i32 = arith.constant 0 : i32
    return %arg0, %arg1, %arg2 : i32, i32, i32
  }
}

</mosaic_0001>

<bundles_post_ra>
// kernel: tpu_custom_call.1
= control target key start
LH: loop header
LB: loop body
LE: loop exit
PB: predicated region body
PF: predicated region fallthrough
CT: control target
= control target key end

     0   :  { %6 = vsyncpa [#allocation3], 0  ;;  %s593_s0 = inlined_call_operand.vmem [shape: f32[2,64,16], index: 0, kind: input, shape index: {}]   ;;  %s594_s1 = inlined_call_operand.hbm [shape: f32[2,16,64], index: 1, kind: output, shape index: {}]  }
   0x1   :  { %8 = vsyncpa [#allocation3 + $0x1], 0  ;;  %s478_s6 = smov 0   ;;  %s480_s7 = smov 0  }
   0x2   :  { %s482_s8 = smov 0   ;;  %s484_s9 = smov 0  }
   0x3   :  { %s486_s10 = smov 0   ;;  %s488_s11 = smov 0  }
   0x4 LB: > { %s312_s12 = sadd.s32 4294967295, %s463_s11   ;;  %s313_s13 = sadd.s32 4294967294, %s463_s11   ;;  %s463_s11 = sphi %s488_s11, %s14_s11   ;;  %s459_s10 = sphi %s486_s10, %s601_s10   ;;  %s455_s9 = sphi %s484_s9, %s600_s9   ;;  %s451_s8 = sphi %s482_s8, %s599_s8   ;;  %s447_s7 = sphi %s480_s7, %s598_s7   ;;  %s443_s6 = sphi %s478_s6, %s597_s6  }
   0x5   : > { %s33_s14 = sadd.s32 1, %s459_s10  ;;  %s74_s15 = sadd.s32 1, %s451_s8 }
   0x6   : > { %p35_p0 = scmp.ge.s32.totalorder %s33_s14, 2  ;;  %p84_p1 = scmp.ne.s32.totalorder %s451_s8, %s447_s7 }
   0x7   : > { %p85_p2 = scmp.eq.s32.totalorder %s312_s12, 1  ;;  %p90_p3 = scmp.ne.s32.totalorder %s447_s7, %s443_s6 }
   0x8   : > { %s603_s14 = smov (%p35_p0, %s33_s14), 0  ;;  %p91_p5 = scmp.eq.s32.totalorder %s313_s13, 1 }
   0x9   : > { %p518_p4 = por %p85_p2, %p84_p1  ;;  %s67_s17 = ssub.s32 %s459_s10, %s603_s14 }
   0xa   : > { %p316_p6 = scmp.ge.s32.totalorder %s463_s11, 1  ;;  %p72_p7 = scmp.eq.s32.totalorder %s67_s17, 0 }
   0xb   : > { %p525_p8 = por %p91_p5, %p90_p3  ;;  %p125_p9 = scmp.lt.s32.totalorder %s463_s11, 3 }
   0xc   : > { %s531_s19 = scalar_select %p72_p7, %s451_s8, %s74_s15  }
   0xd   : > { %p126_p10 = pnand %p316_p6, %p125_p9 }
   0xe   : > { %p153_p11 = scmp.lt.s32.totalorder (!%p126_p10), %s455_s9, 1  ;;  %s149_s25 = sand.u32 (!%p126_p10), 1, %s447_s7   ;;  %vm206_vm0 = vcmask (!%p126_p10), 523264  }
   0xf   : > { %129 = sbr.rel (%p126_p10) target bundleno = 175 (0xaf), region = 24  ;;  %s317_s26 = sshll.u32 (!%p126_p10), %s149_s25, 4 }
  0x10   : > { %s151_s27 = scalar_lea.vmem (!%p126_p10), [#allocation2], %s317_s26  ;;  %s326_s29 = sshll.u32 (!%p126_p10), %s455_s9, 8 }
  0x11   : > { %s226_s28 = sshll.u32 (!%p126_p10), %s151_s27, 4  ;;  %s545_s3 = scalar_lea.hbm (!%p126_p10), %s594_s1, %s326_s29  ;;  %s540_s28 = int_to_ptr.vmem [resolvable:$true] %s226_s28 }
  0x12   : > { %s547_s4 = scalar_lea.sflag (!%p126_p10), [#allocation3], %s149_s25  ;;  %s385_s5 = scalar_lea.vmem (!%p126_p10), %s540_s28, 256 }
  0x13   : > { %p386_p12 = scmp.ne.s32.totalorder (!%p126_p10), %s540_s28, %s385_s5 }
  0x15   : > { %p387_p13 = pnand (!%p126_p10), %p386_p12, %p518_p4 }
  0x16   : > { %s154_s20 = scalar_select %p153_p11, %s455_s9, 1 }
  0x17   : > { %p388_p0 = pneg %p387_p13  ;;  %s465_s9 = smov [#allocation2]  }
  0x18   : > { %s325_s21 = sshll.u32 %s154_s20, 6  ;;  %s389_s12 = sshll.u32 %s465_s9, 4  ;;  %s390_s12 = int_to_ptr.vmem [resolvable:$false] %s389_s12 }
  0x19   : > { %s163_s24 = scalar_lea.vmem %s593_s0, %s325_s21  ;;  %s391_s13 = scalar_lea.vmem %s390_s12, 512 }
  0x1a   : > { %v166_v0 = vld [vmem:[%s163_s24] sm:$0xff]  ;;  %v167_v1 = vld [vmem:[%s163_s24 + $0x8] sm:$0xff]  ;;  %v168_v2 = vld [vmem:[%s163_s24 + $0x10] sm:$0xff]  ;;  %p392_p1 = scmp.lt.s32.totalorder %s540_s28, %s390_s12  ;;  %p393_p2 = scmp.lt.s32.totalorder %s391_s13, %s385_s5 }
  0x1b   : > { %174 = vxpose.xlu0.b32.start [1/8] (short) (narrow) %v166_v0, 16  ;;  %v169_v3 = vld [vmem:[%s163_s24 + $0x18] sm:$0xff]  ;;  %v170_v4 = vld [vmem:[%s163_s24 + $0x20] sm:$0xff]  ;;  %v171_v5 = vld [vmem:[%s163_s24 + $0x28] sm:$0xff] }
  0x1c   : > { %v172_v6 = vld [vmem:[%s163_s24 + $0x30] sm:$0xff]  ;;  %v173_v7 = vld [vmem:[%s163_s24 + $0x38] sm:$0xff]  ;;  %p394_p3 = por %p393_p2, %p392_p1 }
  0x1e   : > { %p395_p5 = pnand %p394_p3, %p388_p0 }
  0x1f   : > { %175 = vxpose.xlu0.b32.cont [2/8] (short) (narrow) %v167_v1, 16 }
  0x23   : > { %176 = vxpose.xlu0.b32.cont [3/8] (short) (narrow) %v168_v2, 16 }
  0x27   : > { %177 = vxpose.xlu0.b32.cont [4/8] (short) (narrow) %v169_v3, 16 }
  0x2b   : > { %178 = vxpose.xlu0.b32.cont [5/8] (short) (narrow) %v170_v4, 16 }
  0x2f   : > { %179 = vxpose.xlu0.b32.cont [6/8] (short) (narrow) %v171_v5, 16 }
  0x33   : > { %180 = vxpose.xlu0.b32.cont [7/8] (short) (narrow) %v172_v6, 16 }
  0x37   : > { %181 = vxpose.xlu0.b32.end [8/8] (short) (narrow) %v173_v7, 16 }
  0x9b   : > { %v190_v8 = vpop.trf.xlu0 }
  0x9c   : > { %207 = vst.msk [vmem:[%s151_s27] sm:$0xff] %vm206_vm0, %v190_v8 }
  0x9f   : > { %v191_v9 = vpop.trf.xlu0 }
  0xa0   : > { %208 = vst.msk [vmem:[%s151_s27 + $0x8] sm:$0xff] %vm206_vm0, %v191_v9 }
  0xa1   : > { %398 = shalt.err (!%p395_p5)
}
  0xa2   : > { %s399_s15 = scalar_lea.hbm %s545_s3, 256  ;;  %s403_s21 = scalar_lea.hbm %s594_s1, 512 }
  0xa3   : > { %p400_p6 = scmp.ne.s32.totalorder %s545_s3, %s399_s15  ;;  %p404_p10 = scmp.lt.u32.totalorder %s545_s3, %s594_s1 }
  0xa4   : > { %p405_p11 = scmp.lt.u32.totalorder %s403_s21, %s399_s15  ;;  %p407_p13 = scmp.lt.u32.totalorder %s399_s15, %s545_s3 }
  0xa5   : > { %p401_p7 = pnand %p400_p6, %p518_p4 }
  0xa6   : > { %p406_p12 = por %p405_p11, %p404_p10 }
  0xa7   : > { %p402_p9 = pneg %p401_p7 }
  0xa8   : > { %p408_p0 = por %p407_p13, %p406_p12 }
  0xaa   : > { %p409_p1 = pnand %p408_p0, %p402_p9 }
  0xac   : > { %412 = shalt.err (!%p409_p1)
}
  0xad   : > { %s466_s24 = smov 128   ;;  %s467_s25 = smov 8  }
  0xae   : > { %327 = dma.vmem_to_hbm [thread:$0]  (%p518_p4), %s540_s28, 256, %s545_s3, %s547_s4, %s466_s24, %s466_s24, %s467_s25  }
  0xaf PF: > { %p333_p2 = scmp.ge.s32.totalorder %s463_s11, 2  ;;  %s241_s26 = sand.u32 1, %s443_s6  }
  0xb0   : > { %s242_s27 = scalar_lea.sflag [#allocation3], %s241_s26 }
  0xb1   : > { %p330_p3 = pnand %p333_p2, %p525_p8 }
  0xb3   : > { %438 = dma.done.wait (!%p330_p3), %s242_s27, 256  }
  0xb4   : > { %440 = vsyncadd (!%p330_p3), %s242_s27, 4294967040  ;;  %s14_s11 = sadd.s32 1, %s463_s11   ;;  %s597_s6 = smov %s447_s7 }
  0xb5   : > { %p11_p5 = scmp.ge.s32.totalorder %s14_s11, 4   ;;  %s598_s7 = smov %s451_s8 }
  0xb6   : > { %s599_s8 = smov %s531_s19  ;;  %s600_s9 = smov %s459_s10 }
  0xb7   : > { %s601_s10 = smov %s603_s14  ;;  %13 = sbr.rel (!%p11_p5) target bundleno = 4 (0x4), region = 59 }
  0xbe   :  { %247 = vsyncpa [#allocation3], 1 }
  0xbf   :  { %249 = vsyncpa [#allocation3 + $0x1], 1 }

</bundles_post_ra>
